<compile_context>
chip_gen: v7x
topology: tpu7x:2x2x1
jax: 0.10.0
libtpu: 0.0.40
codegen_flags: <defaults>
</compile_context>

<pallas_src>
import jax
import jax.numpy as jnp
from jax import lax
from jax.experimental import pallas as pl
from jax.experimental.pallas import tpu as pltpu


def _round_up(v, m):
    return (v + m - 1) // m * m


def _mlp_kernel(x_ref, w1_ref, b1_ref, w2_ref, b2_ref, w3_ref, b3_ref, o_ref):
    """Fused 3-layer MLP; batch lives on the lane axis throughout.

    x_ref : (block_m, in) f32    w1_ref: (h, in) f32     b1_ref: (h, 1) f32
    w2_ref: (h, h)  bf16         b2_ref: (h, 1) f32
    w3_ref: (h, 1)  f32          b3_ref: (1, 1) f32 in SMEM
    o_ref : (1, block_m) f32     (lane-dense output slab)
    """
    # Layer 1: contract the `in` axis directly (w1 @ x^T as an A@B^T matmul),
    # f32 on the MXU.  No wrapper transpose of x is needed; result is (h, bm).
    h1 = lax.dot_general(
        w1_ref[...], x_ref[...],
        dimension_numbers=(((1,), (1,)), ((), ())),
        preferred_element_type=jnp.float32)
    h1 = jnp.maximum(h1 + b1_ref[...], 0.0)            # bias + ReLU
    # Dropout: identity in eval/inference mode.

    # Layer 2: (h, h) bf16 MXU matmul, f32 accumulation -> (h, bm).
    h2 = jnp.dot(w2_ref[...], h1.astype(w2_ref.dtype),
                 preferred_element_type=jnp.float32)
    h2 = jnp.maximum(h2 + b2_ref[...], 0.0)             # bias + ReLU

    # Layer 3 (hidden -> 1): VPU multiply + sublane reduction instead of an
    # N=1 MXU matmul; result is already lane-dense (1, bm).
    out = jnp.sum(h2 * w3_ref[...], axis=0, keepdims=True) + b3_ref[0, 0]
    o_ref[...] = out.astype(o_ref.dtype)


def mse_model_forward(x, params, *, block_m=None, block_m_cap=2048):
    """Runs the mse_model forward pass with a single fused Pallas kernel.

    x: (N, in_shape) float32
    params: dict with w1 (h,in) f32, b1 (h,1) f32, w2 (h,h) bf16 (see
            prepare_params), b2 (h,1) f32, w3 (h,1) f32, b3 (1,1) f32.
    Returns the squeezed output, matching torch.squeeze semantics.
    For repeated inference, jit this wrapper (see __main__) so the small
    pad/slice epilogue fuses with the call.
    """
    n, in_shape = x.shape
    hidden = params["w1"].shape[0]

    if block_m is None:
        # Large lane-dense batch tiles: amortize the ~0.35 us per-step grid
        # overhead (the dominant cost at this problem size).
        block_m = min(block_m_cap, _round_up(n, 128))
        # v7x has 2 TensorCores: keep >= 2 "parallel" grid steps when there is
        # enough work so both cores get a share (costs nothing on v5e/v6e).
        if n > 128:
            block_m = min(block_m, _round_up(-(-n // 2), 128))
    block_m = _round_up(block_m, 128)

    num_blocks = -(-n // block_m)
    padded_n = num_blocks * block_m

    # Only remaining host-side prep: zero-pad ragged batches so every grid
    # step reads an in-bounds (block_m, in) tile.  No transpose / dtype cast
    # passes over x; under jit this is a single fused copy (skipped entirely
    # when N is already a multiple of block_m).
    if padded_n != n:
        x = jnp.pad(x, ((0, padded_n - n), (0, 0)))

    w1, b1 = params["w1"], params["b1"]
    w2, b2 = params["w2"], params["b2"]
    w3, b3 = params["w3"], params["b3"]

    const = lambda shape: pl.BlockSpec(shape, lambda i: (0, 0))

    cost = pl.CostEstimate(
        flops=2 * padded_n * (in_shape * hidden + hidden * hidden + hidden),
        transcendentals=0,
        bytes_accessed=int(
            padded_n * in_shape * x.dtype.itemsize      # x
            + padded_n * 4                              # output
            + w1.size * w1.dtype.itemsize
            + w2.size * w2.dtype.itemsize
            + (b1.size + b2.size + w3.size + b3.size) * 4),
    )

    out = pl.pallas_call(
        _mlp_kernel,
        out_shape=jax.ShapeDtypeStruct((num_blocks, block_m), jnp.float32),
        grid=(num_blocks,),
        in_specs=[
            pl.BlockSpec((block_m, in_shape), lambda i: (i, 0)),     # x tile
            const((hidden, in_shape)),                               # w1
            const((hidden, 1)),                                      # b1
            const((hidden, hidden)),                                 # w2
            const((hidden, 1)),                                      # b2
            const((hidden, 1)),                                      # w3
            pl.BlockSpec(memory_space=pltpu.MemorySpace.SMEM),       # b3 scalar
        ],
        out_specs=pl.BlockSpec((1, block_m), lambda i: (i, 0)),      # lane-dense
        compiler_params=pltpu.CompilerParams(
            dimension_semantics=("parallel",),
        ),
        cost_estimate=cost,
    )(x, w1, b1, w2, b2, w3, b3)

    out = out.reshape(padded_n)[:n]
    # torch.squeeze: also drops the batch dim when N == 1.
    return jnp.squeeze(out)


def _orthogonal(key, rows, cols):
    """Deterministic orthogonal init, like nn.init.orthogonal_."""
    a = jax.random.normal(key, (max(rows, cols), min(rows, cols)), jnp.float32)
    q, r = jnp.linalg.qr(a)
    q = q * jnp.sign(jnp.diagonal(r))[None, :]
    if rows < cols:
        q = q.T
    return q[:rows, :cols]


def init_params(key, in_shape, hidden_size):
    """PyTorch-equivalent f32 parameters (weights in (out, in) layout)."""
    k1, k2, k3 = jax.random.split(key, 3)
    w1 = _orthogonal(k1, hidden_size, in_shape)        # (h, in)
    w2 = _orthogonal(k2, hidden_size, hidden_size)     # (h, h)
    w3 = _orthogonal(k3, 1, hidden_size)                # (1, h)
    return {
        "w1": w1.astype(jnp.float32),
        "b1": jnp.zeros((hidden_size, 1), jnp.float32),
        "w2": w2.astype(jnp.float32),
        "b2": jnp.zeros((hidden_size, 1), jnp.float32),
        "w3": w3.T.astype(jnp.float32),                 # stored (h, 1) column
        "b3": jnp.zeros((1, 1), jnp.float32),
    }


def prepare_params(params, compute_dtype=jnp.bfloat16):
    """One-time cast of the hidden-layer weight to the MXU compute dtype.

    Done once at setup (not per forward call).  w1 stays f32: layer 1
    contracts only `in_shape` elements, so bf16 buys nothing there.
    """
    p = dict(params)
    p["w2"] = params["w2"].astype(compute_dtype)
    return p


def _reference_forward(x, p):
    """Pure-JAX reference mirroring the kernel's numerics (f32 accumulation,
    bf16 only on the hidden->hidden matmul inputs)."""
    f32 = jnp.float32
    h1 = jnp.maximum(x.astype(f32) @ p["w1"].astype(f32).T + p["b1"].T, 0.0)
    h1 = h1.astype(jnp.bfloat16).astype(f32)
    w2 = p["w2"].astype(jnp.bfloat16).astype(f32)
    h2 = jnp.maximum(h1 @ w2.T + p["b2"].T, 0.0)
    out = h2 @ p["w3"].astype(f32) + p["b3"]
    return jnp.squeeze(out)


if __name__ == "__main__":
    key = jax.random.PRNGKey(0)
    k_x, k_p = jax.random.split(key)

    in_shape, hidden = 4, 32
    params = prepare_params(init_params(k_p, in_shape, hidden))

    # Jit the wrappers so the (possible) pad and the output slice fuse with
    # the kernel dispatch (block_m is static per closure).
    fwd = jax.jit(lambda x, p: mse_model_forward(x, p))
    fwd_128 = jax.jit(lambda x, p: mse_model_forward(x, p, block_m=128))

    # Case 1: small batch -> single 128-row tile, padded rows sliced off.
    x_small = jax.random.normal(k_x, (8, in_shape), jnp.float32)
    y_small = jax.block_until_ready(fwd(x_small, params))
    assert y_small.shape == (8,)
    assert jnp.allclose(y_small, _reference_forward(x_small, params),
                        atol=1e-3, rtol=1e-3)

    # Case 2: default tiling on a ragged batch -> block_m=256, 2 "parallel"
    # grid steps (one per TensorCore on v7x), zero-padded tail block.
    x_big = jax.random.normal(k_x, (300, in_shape), jnp.float32)
    y_def = jax.block_until_ready(fwd(x_big, params))
    assert y_def.shape == (300,)
    assert jnp.allclose(y_def, _reference_forward(x_big, params),
                        atol=1e-3, rtol=1e-3)

    # Case 3: explicit small tile -> 3 grid steps, exercises multi-block
    # accumulation of lane-dense (1, block_m) output slabs + output slice.
    y_big = jax.block_until_ready(fwd_128(x_big, params))
    assert y_big.shape == (300,)
    assert jnp.allclose(y_big, _reference_forward(x_big, params),
                        atol=1e-3, rtol=1e-3)

    print("KERNEL_OK")
</pallas_src>

<mosaic_0001>
module attributes {stable_mosaic.version = 11 : i64} {
  func.func @_mlp_kernel(%arg0: i32, %arg1: memref<128x4xf32, #tpu.memory_space<vmem>>, %arg2: memref<32x4xf32, #tpu.memory_space<vmem>>, %arg3: memref<32x1xf32, #tpu.memory_space<vmem>>, %arg4: memref<32x32xbf16, #tpu.memory_space<vmem>>, %arg5: memref<32x1xf32, #tpu.memory_space<vmem>>, %arg6: memref<32x1xf32, #tpu.memory_space<vmem>>, %arg7: memref<1x1xf32, #tpu.memory_space<smem>>, %arg8: memref<1x128xf32, #tpu.memory_space<vmem>>) attributes {dimension_semantics = [#tpu.dimension_semantics<parallel>], iteration_bounds = array<i64: 1>, scalar_prefetch = 0 : i64, scratch_operands = 0 : i64, tpu.core_type = #tpu.core_type<tc>, window_params = [{transform_indices = @transform_0, window_bounds = array<i64: 128, 4>}, {pipeline_mode = #tpu.pipeline_mode<synchronous>, transform_indices = @transform_1, window_bounds = array<i64: 32, 4>}, {pipeline_mode = #tpu.pipeline_mode<synchronous>, transform_indices = @transform_2, window_bounds = array<i64: 32, 1>}, {pipeline_mode = #tpu.pipeline_mode<synchronous>, transform_indices = @transform_3, window_bounds = array<i64: 32, 32>}, {pipeline_mode = #tpu.pipeline_mode<synchronous>, transform_indices = @transform_4, window_bounds = array<i64: 32, 1>}, {pipeline_mode = #tpu.pipeline_mode<synchronous>, transform_indices = @transform_5, window_bounds = array<i64: 32, 1>}, {transform_indices = @transform_6, window_bounds = array<i64: 1, 1>}, {transform_indices = @transform_7, window_bounds = array<i64: 1, 128>}]} {
    %c0 = arith.constant 0 : index
    %c0_0 = arith.constant 0 : index
    %0 = vector.load %arg2[%c0, %c0_0] : memref<32x4xf32, #tpu.memory_space<vmem>>, vector<32x4xf32>
    %c0_1 = arith.constant 0 : index
    %c0_2 = arith.constant 0 : index
    %1 = vector.load %arg1[%c0_1, %c0_2] : memref<128x4xf32, #tpu.memory_space<vmem>>, vector<128x4xf32>
    %cst = arith.constant dense<0.000000e+00> : vector<32x128xf32>
    %2 = tpu.matmul %0, %1, %cst {dimension_numbers = #tpu.dot_dimension_numbers<[1], [1], [0], [0], [0, 0, 1, 0], [], []>} : vector<32x4xf32>, vector<128x4xf32>, vector<32x128xf32> -> vector<32x128xf32>
    %c0_3 = arith.constant 0 : index
    %c0_4 = arith.constant 0 : index
    %3 = vector.load %arg3[%c0_3, %c0_4] : memref<32x1xf32, #tpu.memory_space<vmem>>, vector<32x1xf32>
    %4 = vector.broadcast %3 : vector<32x1xf32> to vector<32x128xf32>
    %5 = arith.addf %2, %4 : vector<32x128xf32>
    %cst_5 = arith.constant 0.000000e+00 : f32
    %6 = vector.broadcast %cst_5 : f32 to vector<32x128xf32>
    %7 = arith.maximumf %5, %6 : vector<32x128xf32>
    %c0_6 = arith.constant 0 : index
    %c0_7 = arith.constant 0 : index
    %8 = vector.load %arg4[%c0_6, %c0_7] : memref<32x32xbf16, #tpu.memory_space<vmem>>, vector<32x32xbf16>
    %9 = arith.truncf %7 : vector<32x128xf32> to vector<32x128xbf16>
    %cst_8 = arith.constant dense<0.000000e+00> : vector<32x128xf32>
    %10 = tpu.matmul %8, %9, %cst_8 {dimension_numbers = #tpu.dot_dimension_numbers<[1], [0], [0], [1], [0, 0, 1, 1], [], []>} : vector<32x32xbf16>, vector<32x128xbf16>, vector<32x128xf32> -> vector<32x128xf32>
    %c0_9 = arith.constant 0 : index
    %c0_10 = arith.constant 0 : index
    %11 = vector.load %arg5[%c0_9, %c0_10] : memref<32x1xf32, #tpu.memory_space<vmem>>, vector<32x1xf32>
    %12 = vector.broadcast %11 : vector<32x1xf32> to vector<32x128xf32>
    %13 = arith.addf %10, %12 : vector<32x128xf32>
    %cst_11 = arith.constant 0.000000e+00 : f32
    %14 = vector.broadcast %cst_11 : f32 to vector<32x128xf32>
    %15 = arith.maximumf %13, %14 : vector<32x128xf32>
    %c0_12 = arith.constant 0 : index
    %c0_13 = arith.constant 0 : index
    %16 = vector.load %arg6[%c0_12, %c0_13] : memref<32x1xf32, #tpu.memory_space<vmem>>, vector<32x1xf32>
    %17 = vector.broadcast %16 : vector<32x1xf32> to vector<32x128xf32>
    %18 = arith.mulf %15, %17 : vector<32x128xf32>
    %cst_14 = arith.constant dense<0.000000e+00> : vector<128xf32>
    %19 = vector.multi_reduction <add>, %18, %cst_14 [0] : vector<32x128xf32> to vector<128xf32>
    %20 = vector.shape_cast %19 : vector<128xf32> to vector<1x128xf32>
    %c0_15 = arith.constant 0 : index
    %c0_16 = arith.constant 0 : index
    %21 = memref.load %arg7[%c0_15, %c0_16] : memref<1x1xf32, #tpu.memory_space<smem>>
    %22 = vector.broadcast %21 : f32 to vector<1x128xf32>
    %23 = arith.addf %20, %22 : vector<1x128xf32>
    %c0_17 = arith.constant 0 : index
    %c0_18 = arith.constant 0 : index
    %24 = vector.load %arg8[%c0_17, %c0_18] : memref<1x128xf32, #tpu.memory_space<vmem>>, vector<1x128xf32>
    tpu.vector_store %arg8[%c0_17, %c0_18], %23 {strides = array<i32>} : memref<1x128xf32, #tpu.memory_space<vmem>>, vector<1x128xf32>,
    return
  }
  func.func @transform_0(%arg0: i32) -> (i32, i32) {
    %c0_i32 = arith.constant 0 : i32
    %c0_i32_0 = arith.constant 0 : i32
    return %arg0, %c0_i32 : i32, i32
  }
  func.func @transform_1(%arg0: i32) -> (i32, i32) {
    %c0_i32 = arith.constant 0 : i32
    %c0_i32_0 = arith.constant 0 : i32
    %c0_i32_1 = arith.constant 0 : i32
    return %c0_i32, %c0_i32_0 : i32, i32
  }
  func.func @transform_2(%arg0: i32) -> (i32, i32) {
    %c0_i32 = arith.constant 0 : i32
    %c0_i32_0 = arith.constant 0 : i32
    %c0_i32_1 = arith.constant 0 : i32
    return %c0_i32, %c0_i32_0 : i32, i32
  }
  func.func @transform_3(%arg0: i32) -> (i32, i32) {
    %c0_i32 = arith.constant 0 : i32
    %c0_i32_0 = arith.constant 0 : i32
    %c0_i32_1 = arith.constant 0 : i32
    return %c0_i32, %c0_i32_0 : i32, i32
  }
  func.func @transform_4(%arg0: i32) -> (i32, i32) {
    %c0_i32 = arith.constant 0 : i32
    %c0_i32_0 = arith.constant 0 : i32
    %c0_i32_1 = arith.constant 0 : i32
    return %c0_i32, %c0_i32_0 : i32, i32
  }
  func.func @transform_5(%arg0: i32) -> (i32, i32) {
    %c0_i32 = arith.constant 0 : i32
    %c0_i32_0 = arith.constant 0 : i32
    %c0_i32_1 = arith.constant 0 : i32
    return %c0_i32, %c0_i32_0 : i32, i32
  }
  func.func @transform_6(%arg0: i32) -> (i32, i32) {
    %c0_i32 = arith.constant 0 : i32
    %c0_i32_0 = arith.constant 0 : i32
    %c0_i32_1 = arith.constant 0 : i32
    return %c0_i32, %c0_i32_0 : i32, i32
  }
  func.func @transform_7(%arg0: i32) -> (i32, i32) {
    %c0_i32 = arith.constant 0 : i32
    %c0_i32_0 = arith.constant 0 : i32
    return %arg0, %c0_i32 : i32, i32
  }
}

</mosaic_0001>

<bundles_post_ra>
// kernel: _lambda_.1
= control target key start
LH: loop header
LB: loop body
LE: loop exit
PB: predicated region body
PF: predicated region fallthrough
CT: control target
= control target key end

     0   :  { %vm72_vm0 = vcmask 31744   ;;  %v514_v3 = vmov 0   ;;  %vm262_vm2 = vcmask 261120   ;;  %s707_s0 = inlined_call_operand.vmem [shape: f32[128,4], index: 0, kind: input, shape index: {}]   ;;  %s708_s1 = inlined_call_operand.vmem [shape: f32[32,4], index: 1, kind: input, shape index: {}]   ;;  %s709_s2 = inlined_call_operand.vmem [shape: f32[32,1], index: 2, kind: input, shape index: {}]   ;;  %s710_s4 = inlined_call_operand.vmem [shape: f32[32,1], index: 4, kind: input, shape index: {}]   ;;  %s711_s5 = inlined_call_operand.vmem [shape: f32[32,1], index: 5, kind: input, shape index: {}]   ;;  %s712_s3 = inlined_call_operand.vmem [shape: bf16[32,32], index: 3, kind: input, shape index: {}]   ;;  %s713_s6 = inlined_call_operand.<no memory space> [shape: f32[1,1], index: 6, kind: input, shape index: {}]   ;;  %s714_s7 = inlined_call_operand.vmem [shape: f32[1,128], index: 7, kind: output, shape index: {}]  }
   0x1   :  { %v32_v0 = vld [vmem:[%s707_s0] sm:$0xff]  ;;  %v33_v1 = vld [vmem:[%s707_s0 + $0x8] sm:$0xff]  ;;  %vm563_vm1 = vmpackc.low %vm72_vm0, %vm72_vm0  ;;  %510 = vset.pattern.permute.xlu0 %v514_v3  ;;  %511 = vset.pattern.permute.xlu1 %v514_v3 }
   0x2   :  { %v461_v4 = vpack.c.bf16 %v33_v1, %v32_v0  ;;  %v34_v5 = vld [vmem:[%s707_s0 + $0x10] sm:$0xff]  ;;  %v35_v6 = vld [vmem:[%s707_s0 + $0x18] sm:$0xff]  ;;  %v28_v8 = vld [vmem:[%s708_s1] sm:$0xff] }
   0x3   :  { %v467_v7 = vpack.c.bf16 %v35_v6, %v34_v5  ;;  %v36_v9 = vld [vmem:[%s707_s0 + $0x20] sm:$0xff]  ;;  %v37_v10 = vld [vmem:[%s707_s0 + $0x28] sm:$0xff]  ;;  %447 = vmatprep.mubr.msk.f32.mxu0 %vm72_vm0, %v28_v8  ;;  %v50_v12 = vld [vmem:[%s709_s2 + $0x10] sm:$0xff] }
   0x4   :  { %463 = vmatprep.subr.msk.bf16.mxu0 %vm563_vm1, %v461_v4  ;;  %v48_v11 = vld [vmem:[%s709_s2] sm:$0xff]  ;;  %64 = vperm.xlu1 %511, %v50_v12   ;;  %v473_v13 = vpack.c.bf16 %v37_v10, %v36_v9  ;;  %v49_v14 = vld [vmem:[%s709_s2 + $0x8] sm:$0xff]  ;;  %v51_v15 = vld [vmem:[%s709_s2 + $0x18] sm:$0xff] }
   0x5   :  { %466 = vmatpush3.bf16.xpose.msk.msra.mxu0 %vm563_vm1, %v461_v4  ;;  %54 = vperm.xlu0 %510, %v48_v11   ;;  %v228_v16 = vld [vmem:[%s710_s4] sm:$0xff]  ;;  %v38_v17 = vld [vmem:[%s707_s0 + $0x30] sm:$0xff]  ;;  %v39_v18 = vld [vmem:[%s707_s0 + $0x38] sm:$0xff] }
   0x6   :  { %469 = vmatprep.subr.msk.bf16.mxu0 %vm563_vm1, %v467_v7  ;;  %v229_v19 = vld [vmem:[%s710_s4 + $0x8] sm:$0xff]  ;;  %v479_v20 = vpack.c.bf16 %v39_v18, %v38_v17  ;;  %v230_v21 = vld [vmem:[%s710_s4 + $0x10] sm:$0xff]  ;;  %v231_v22 = vld [vmem:[%s710_s4 + $0x18] sm:$0xff] }
   0x7   :  { %v322_v23 = vld [vmem:[%s711_s5] sm:$0xff]  ;;  %v41_v25 = vld [vmem:[%s707_s0 + $0x48] sm:$0xff]  ;;  %v324_v28 = vld [vmem:[%s711_s5 + $0x10] sm:$0xff] }
   0x8   :  { %69 = vperm.xlu1 %511, %v51_v15   ;;  %v40_v24 = vld [vmem:[%s707_s0 + $0x40] sm:$0xff]  ;;  %v323_v26 = vld [vmem:[%s711_s5 + $0x8] sm:$0xff]  ;;  %v325_v29 = vld [vmem:[%s711_s5 + $0x18] sm:$0xff] }
   0x9   :  { %59 = vperm.xlu0 %510, %v49_v14   ;;  %v485_v27 = vpack.c.bf16 %v41_v25, %v40_v24  ;;  %v42_v30 = vld [vmem:[%s707_s0 + $0x50] sm:$0xff]  ;;  %v43_v31 = vld [vmem:[%s707_s0 + $0x58] sm:$0xff]  ;;  %v44_v33 = vld [vmem:[%s707_s0 + $0x60] sm:$0xff] }
   0xa   :  { %v491_v32 = vpack.c.bf16 %v43_v31, %v42_v30  ;;  %v45_v34 = vld [vmem:[%s707_s0 + $0x68] sm:$0xff]  ;;  %v46_v36 = vld [vmem:[%s707_s0 + $0x70] sm:$0xff]  ;;  %v47_v37 = vld [vmem:[%s707_s0 + $0x78] sm:$0xff]  ;;  %v360_v30 = vstv %s713_s6 }
   0xb   :  { %v497_v35 = vpack.c.bf16 %v45_v34, %v44_v33  ;;  %v503_v38 = vpack.c.bf16 %v47_v37, %v46_v36  ;;  %v29_v39 = vld [vmem:[%s708_s1 + $0x8] sm:$0xff]  ;;  %v30_v40 = vld [vmem:[%s708_s1 + $0x10] sm:$0xff]  ;;  %v31_v41 = vld [vmem:[%s708_s1 + $0x18] sm:$0xff] }
   0xc   :  { %239 = vperm.xlu1 %511, %v229_v19   ;;  %v512_v42 = vld [vmem:[%s712_s3] sm:$0xff]   ;;  %v513_v61 = vld [vmem:[%s712_s3 + $0x8] sm:$0xff]  }
   0xd   :  { %472 = vmatpush3.bf16.xpose.msk.msra.mxu0 %vm563_vm1, %v467_v7  ;;  %234 = vperm.xlu0 %510, %v228_v16  }
   0xe   :  { %475 = vmatprep.subr.msk.bf16.mxu0 %vm563_vm1, %v473_v13  ;;  %457 = vmatprep.mubr.msk.bf16.mxu1 %vm262_vm2, %v512_v42 }
  0x10   :  { %249 = vperm.xlu1 %511, %v231_v22  }
  0x11   :  { %244 = vperm.xlu0 %510, %v230_v21  }
  0x14   :  { %333 = vperm.xlu1 %511, %v323_v26  }
  0x15   :  { %478 = vmatpush3.bf16.xpose.msk.msra.mxu0 %vm563_vm1, %v473_v13  ;;  %328 = vperm.xlu0 %510, %v322_v23  }
  0x16   :  { %481 = vmatprep.subr.msk.bf16.mxu0 %vm563_vm1, %v479_v20 }
  0x18   :  { %343 = vperm.xlu1 %511, %v325_v29  }
  0x19   :  { %338 = vperm.xlu0 %510, %v324_v28  }
  0x1d   :  { %484 = vmatpush3.bf16.xpose.msk.msra.mxu0 %vm563_vm1, %v479_v20 }
  0x1e   :  { %487 = vmatprep.subr.msk.bf16.mxu0 %vm563_vm1, %v485_v27 }
  0x25   :  { %490 = vmatpush3.bf16.xpose.msk.msra.mxu0 %vm563_vm1, %v485_v27 }
  0x26   :  { %493 = vmatprep.subr.msk.bf16.mxu0 %vm563_vm1, %v491_v32 }
  0x2d   :  { %496 = vmatpush3.bf16.xpose.msk.msra.mxu0 %vm563_vm1, %v491_v32 }
  0x2e   :  { %499 = vmatprep.subr.msk.bf16.mxu0 %vm563_vm1, %v497_v35 }
  0x35   :  { %502 = vmatpush3.bf16.xpose.msk.msra.mxu0 %vm563_vm1, %v497_v35 }
  0x36   :  { %505 = vmatprep.subr.msk.bf16.mxu0 %vm563_vm1, %v503_v38 }
  0x3d   :  { %508 = vmatpush3.bf16.xpose.msk.msra.mxu0 %vm563_vm1, %v503_v38 }
  0x44   :  { %448 = vmatmul.mubr.msk.f32.vlgmr.msra.gmra.mrb[0].mxu0 %vm72_vm0, %v29_v39 }
  0x45   :  { %450 = vmatprep.mubr.msk.f32.mxu0 %vm72_vm0, %v30_v40 }
  0x48   :  { %451 = vmatmul.mubr.msk.f32.gmra.mrb[2].mxu0 %vm72_vm0, %v31_v41 }
  0x83   :  { %v65_v44 = vpop.permute.xlu1 %64 }
  0x84   :  { %v55_v43 = vpop.permute.xlu0 %54 }
  0x87   :  { %v70_v51 = vpop.permute.xlu1 %69 }
  0x88   :  { %v60_v45 = vpop.permute.xlu0 %59 }
  0x8b   :  { %v240_v63 = vpop.permute.xlu1 %239 }
  0x8c   :  { %v235_v62 = vpop.permute.xlu0 %234 }
  0x8f   :  { %v250_v1 = vpop.permute.xlu1 %249 }
  0x90   :  { %v245_v0 = vpop.permute.xlu0 %244 }
  0x93   :  { %v334_v12 = vpop.permute.xlu1 %333 }
  0x94   :  { %v329_v7 = vpop.permute.xlu0 %328 }
  0x97   :  { %v344_v21 = vpop.permute.xlu1 %343 }
  0x98   :  { %v339_v18 = vpop.permute.xlu0 %338 }
 0x117   :  { %v449_v46 = vpop.f32.mrb[0].mxu0 }
 0x118   :  { %v205_v47 = vadd.f32 %v449_v46, %v60_v45  ;;  %v199_v48 = vpop.f32.mrb[1].mxu0 }
 0x119   :  { %v200_v49 = vadd.f32 %v199_v48, %v55_v43 }
 0x11a   :  { %v219_v50 = vmax.f32 %v205_v47, 0.0 }
 0x11b   :  { %v218_v52 = vmax.f32 %v200_v49, 0.0  ;;  %v452_v53 = vpop.f32.mrb[2].mxu0 }
 0x11c   :  { %v215_v54 = vadd.f32 %v452_v53, %v70_v51  ;;  %v209_v55 = vpop.f32.mrb[3].mxu0 }
 0x11d   :  { %v210_v56 = vadd.f32 %v209_v55, %v65_v44  ;;  %v226_v57 = vpack.c.bf16 %v219_v50, %v218_v52 }
 0x11e   :  { %v221_v58 = vmax.f32 %v215_v54, 0.0 }
 0x11f   :  { %v220_v59 = vmax.f32 %v210_v56, 0.0  ;;  %453 = vmatprep.subr.bf16.mxu1 %v226_v57 }
 0x120   :  { %454 = vmatpush3.bf16.msra.mxu1 %v226_v57 }
 0x121   :  { %v227_v60 = vpack.c.bf16 %v221_v58, %v220_v59 }
 0x123   :  { %455 = vmatprep.subr.bf16.mxu1 %v227_v60 }
 0x124   :  { %456 = vmatpush3.bf16.msra.mxu1 %v227_v60 }
 0x127   :  { %458 = vmatmul.mubr.msk.bf16.vlgmr.msra.gmra.mrb[0].mxu1 %vm262_vm2, %v513_v61 }
 0x1fa   :  { %v459_v2 = vpop.f32.mrb[0].mxu1 }
 0x1fb   :  { %v303_v3 = vpop.f32.mrb[1].mxu1  ;;  %v312_v4 = vadd.f32 %v459_v2, %v245_v0 }
 0x1fc   :  { %v304_v5 = vadd.f32 %v303_v3, %v235_v62  ;;  %v460_v6 = vpop.f32.mrb[2].mxu1 }
 0x1fd   :  { %v306_v8 = vpop.f32.mrb[3].mxu1  ;;  %v315_v10 = vadd.f32 %v460_v6, %v250_v1  ;;  %v320_v13 = vmax.f32 %v312_v4, 0.0 }
 0x1fe   :  { %v318_v9 = vmax.f32 %v304_v5, 0.0  ;;  %v307_v11 = vadd.f32 %v306_v8, %v240_v63 }
 0x1ff   :  { %v321_v16 = vmax.f32 %v315_v10, 0.0  ;;  %v348_v19 = vmul.f32 %v339_v18, %v320_v13 }
 0x200   :  { %v319_v14 = vmax.f32 %v307_v11, 0.0  ;;  %v346_v15 = vmul.f32 %v329_v7, %v318_v9 }
 0x201   :  { %v349_v22 = vmul.f32 %v344_v21, %v321_v16 }
 0x202   :  { %v347_v17 = vmul.f32 %v334_v12, %v319_v14 }
 0x204   :  { %v350_v20 = vadd.f32 %v347_v17, %v346_v15 }
 0x206   :  { %v351_v23 = vadd.f32 %v350_v20, %v348_v19 }
 0x208   :  { %v352_v24 = vadd.f32 %v351_v23, %v349_v22 }
 0x20a   :  { %v353_v25 = vrot.slane %v352_v24, 4 }
 0x20c   :  { %v354_v26 = vadd.f32 %v353_v25, %v352_v24 }
 0x20e   :  { %v355_v27 = vrot.slane %v354_v26, 2 }
 0x210   :  { %v356_v28 = vadd.f32 %v355_v27, %v354_v26 }
 0x212   :  { %v357_v29 = vrot.slane %v356_v28, 1 }
 0x214   :  { %v358_v31 = vadd.f32 %v357_v29, %v356_v28 }
 0x216   :  { %v361_v32 = vadd.f32 %v360_v30, %v358_v31 }
 0x218   :  { %362 = vst [vmem:[%s714_s7] sm:$0x1] %v361_v32 }

</bundles_post_ra>
